<compile_context>
chip_gen: v6e
topology: v6e:2x2x1
jax: 0.10.0
libtpu: 0.0.40
codegen_flags: <defaults>
</compile_context>

<pallas_src>
import functools
import math

import jax
import jax.numpy as jnp
import numpy as np
from jax import lax
from jax.experimental import pallas as pl
from jax.experimental.pallas import tpu as pltpu


def _as_i32(v):
    """Python int -> two's-complement int32 value."""
    v &= 0xFFFFFFFF
    return v - (1 << 32) if v >= (1 << 31) else v


# splitmix32-style mixing constants (as int32).
_GOLDEN = _as_i32(0x9E3779B9)
_MIX1 = _as_i32(0x7FEB352D)
_MIX2 = _as_i32(0x846CA68B)

_TARGET_BLOCK_BYTES = 2 * 1024 * 1024  # ~2 MiB per block: safe on v5e/v6e/v7x.


def _pe_dropout_kernel(seed_ref, x_ref, pe_ref, o_ref, *, batch, p):
    """o = dropout(x + PE).  x_ref/o_ref: (ts*batch, E); pe_ref: (ts, E)."""
    x = x_ref[...]                                   # (ts*batch, E)
    pe = pe_ref[...]                                 # (ts, E)
    ts, emb = pe.shape
    # Expand PE over batch in VMEM (each seq row repeated `batch` times along
    # sublanes) instead of DMA-ing a batch-replicated PE from HBM.
    pe_b = jnp.broadcast_to(pe[:, None, :], (ts, batch, emb)).reshape(ts * batch, emb)
    y = x + pe_b

    if p > 0.0:
        rows, cols = y.shape
        r = lax.broadcasted_iota(jnp.int32, (rows, cols), 0)
        c = lax.broadcasted_iota(jnp.int32, (rows, cols), 1)
        # Unique per-element id for this grid step, mixed with the seed.
        h = (pl.program_id(0) * rows + r) * cols + c
        h = h * jnp.int32(_GOLDEN) + seed_ref[0]
        # splitmix32-style finalizer: int32 arithmetic, logical shifts only.
        h = h ^ lax.shift_right_logical(h, 16)
        h = h * jnp.int32(_MIX1)
        h = h ^ lax.shift_right_logical(h, 15)
        h = h * jnp.int32(_MIX2)
        h = h ^ lax.shift_right_logical(h, 16)
        # Integer-domain keep test on the top 31 bits: P(keep) ~= 1 - p.
        thresh = min(int(round(p * (1 << 31))), (1 << 31) - 1)
        keep = lax.shift_right_logical(h, 1) >= jnp.int32(thresh)
        y = jnp.where(keep, y * (1.0 / (1.0 - p)), jnp.zeros_like(y))

    o_ref[...] = y.astype(o_ref.dtype)


def make_pe_buffer(max_len, embed_size, dtype=jnp.float32):
    """Deterministic PE buffer identical to the PyTorch __init__ ([max_len, E])."""
    position = jnp.arange(max_len, dtype=jnp.float32)[:, None]              # (L, 1)
    div_term = jnp.exp(
        jnp.arange(0, embed_size, 2, dtype=jnp.float32)
        * (-math.log(10000.0) / embed_size))                                # (E/2,)
    sin = jnp.sin(position * div_term)                                      # (L, E/2)
    cos = jnp.cos(position * div_term)                                      # (L, E/2)
    pe = jnp.stack([sin, cos], axis=-1).reshape(max_len, embed_size)        # interleave
    return pe.astype(dtype)


def positional_encoding(x, pe_full, *, dropout_p=0.0, seed=0):
    """x: [S, B, E]; pe_full: [max_len, E].  Returns dropout(x + pe[:S])."""
    S, B, E = x.shape
    if S > pe_full.shape[0]:
        raise ValueError(f"seq_len {S} exceeds max_len {pe_full.shape[0]}")
    if not (0.0 <= dropout_p < 1.0):
        raise ValueError("dropout_p must be in [0, 1)")

    pe = pe_full[:S].astype(x.dtype)          # (S, E), in x's dtype
    x2d = x.reshape(S * B, E)                 # zero-copy for row-major [S, B, E]

    # Seq-axis tile: ~2 MiB blocks, ts a multiple of 8 (sublane rule) unless a
    # single block covers the whole sequence.
    row_bytes = B * E * x.dtype.itemsize
    ts = max(1, _TARGET_BLOCK_BYTES // row_bytes)
    if ts >= S:
        ts = S
    else:
        ts = max(8, (ts // 8) * 8)
        ts = min(ts, S)
    grid = (pl.cdiv(S, ts),)

    kernel = functools.partial(_pe_dropout_kernel, batch=B, p=float(dropout_p))

    out2d = pl.pallas_call(
        kernel,
        out_shape=jax.ShapeDtypeStruct((S * B, E), x.dtype),
        grid_spec=pltpu.PrefetchScalarGridSpec(
            num_scalar_prefetch=1,
            grid=grid,
            in_specs=[
                pl.BlockSpec((ts * B, E), lambda i, seed_ref: (i, 0)),
                pl.BlockSpec((ts, E), lambda i, seed_ref: (i, 0)),
            ],
            out_specs=pl.BlockSpec((ts * B, E), lambda i, seed_ref: (i, 0)),
        ),
        compiler_params=pltpu.CompilerParams(
            dimension_semantics=("parallel",),
        ),
    )(jnp.asarray([seed], dtype=jnp.int32), x2d, pe)

    return out2d.reshape(S, B, E)


if __name__ == "__main__":
    SEQ, BATCH, EMBED = 8, 2, 32
    MAX_LEN = 5000
    DROPOUT_P = 0.1

    key = jax.random.PRNGKey(0)
    x = jax.random.normal(key, (SEQ, BATCH, EMBED), dtype=jnp.float32)
    pe_full = make_pe_buffer(MAX_LEN, EMBED)

    # Eval mode (dropout disabled): exact match against a pure-JAX reference.
    out_eval = jax.block_until_ready(positional_encoding(x, pe_full, dropout_p=0.0))
    ref = x + pe_full[:SEQ][:, None, :]
    np.testing.assert_allclose(np.asarray(out_eval), np.asarray(ref),
                               rtol=1e-6, atol=1e-6)

    # Training mode (in-kernel hashed dropout).  Kept elements must equal
    # ref / (1 - p); dropped elements are exactly zero.
    out_train = jax.block_until_ready(
        positional_encoding(x, pe_full, dropout_p=DROPOUT_P, seed=1234))
    assert out_train.shape == (SEQ, BATCH, EMBED)
    out_np = np.asarray(out_train)
    kept = out_np != 0.0
    np.testing.assert_allclose(out_np[kept],
                               (np.asarray(ref) / (1.0 - DROPOUT_P))[kept],
                               rtol=1e-5, atol=1e-5)

    print("KERNEL_OK")
</pallas_src>

<mosaic_0001>
module attributes {stable_mosaic.version = 11 : i64} {
  func.func @_pe_dropout_kernel(%arg0: i32, %arg1: memref<1xi32, #tpu.memory_space<smem>>, %arg2: memref<16x32xf32, #tpu.memory_space<vmem>>, %arg3: memref<8x32xf32, #tpu.memory_space<vmem>>, %arg4: memref<16x32xf32, #tpu.memory_space<vmem>>) attributes {dimension_semantics = [#tpu.dimension_semantics<parallel>], iteration_bounds = array<i64: 1>, scalar_prefetch = 1 : i64, scratch_operands = 0 : i64, tpu.core_type = #tpu.core_type<tc>, window_params = [{transform_indices = @transform_0, window_bounds = array<i64: 16, 32>}, {transform_indices = @transform_1, window_bounds = array<i64: 8, 32>}, {transform_indices = @transform_2, window_bounds = array<i64: 16, 32>}]} {
    %c0 = arith.constant 0 : index
    %c0_0 = arith.constant 0 : index
    %0 = vector.load %arg2[%c0, %c0_0] : memref<16x32xf32, #tpu.memory_space<vmem>>, vector<16x32xf32>
    %c0_1 = arith.constant 0 : index
    %c0_2 = arith.constant 0 : index
    %1 = vector.load %arg3[%c0_1, %c0_2] : memref<8x32xf32, #tpu.memory_space<vmem>>, vector<8x32xf32>
    %2 = vector.shape_cast %1 : vector<8x32xf32> to vector<8x1x32xf32>
    %3 = vector.shape_cast %2 : vector<8x1x32xf32> to vector<8x1x32xf32>
    %4 = vector.broadcast %3 : vector<8x1x32xf32> to vector<8x2x32xf32>
    %5 = vector.shape_cast %4 : vector<8x2x32xf32> to vector<16x32xf32>
    %6 = arith.addf %0, %5 : vector<16x32xf32>
    %c0_3 = arith.constant 0 : index
    %c0_4 = arith.constant 0 : index
    %7 = vector.load %arg4[%c0_3, %c0_4] : memref<16x32xf32, #tpu.memory_space<vmem>>, vector<16x32xf32>
    tpu.vector_store %arg4[%c0_3, %c0_4], %6 {strides = array<i32>} : memref<16x32xf32, #tpu.memory_space<vmem>>, vector<16x32xf32>,
    return
  }
  func.func @transform_0(%arg0: i32, %arg1: memref<1xi32, #tpu.memory_space<smem>>) -> (i32, i32) {
    %c0_i32 = arith.constant 0 : i32
    %c0_i32_0 = arith.constant 0 : i32
    return %arg0, %c0_i32 : i32, i32
  }
  func.func @transform_1(%arg0: i32, %arg1: memref<1xi32, #tpu.memory_space<smem>>) -> (i32, i32) {
    %c0_i32 = arith.constant 0 : i32
    %c0_i32_0 = arith.constant 0 : i32
    return %arg0, %c0_i32 : i32, i32
  }
  func.func @transform_2(%arg0: i32, %arg1: memref<1xi32, #tpu.memory_space<smem>>) -> (i32, i32) {
    %c0_i32 = arith.constant 0 : i32
    %c0_i32_0 = arith.constant 0 : i32
    return %arg0, %c0_i32 : i32, i32
  }
}

</mosaic_0001>

<bundles_post_ra>
// kernel: tpu_custom_call.1
= control target key start
LH: loop header
LB: loop body
LE: loop exit
PB: predicated region body
PF: predicated region fallthrough
CT: control target
= control target key end

     0   :  { %9 = vsyncpa [#allocation5], 0  ;;  %s299_s0 = inlined_call_operand.<no memory space> [shape: s32[1], index: 0, kind: input, shape index: {}]   ;;  %s300_s1 = inlined_call_operand.hbm [shape: f32[16,32], index: 1, kind: input, shape index: {}]   ;;  %s301_s2 = inlined_call_operand.hbm [shape: f32[8,32], index: 2, kind: input, shape index: {}]   ;;  %s302_s3 = inlined_call_operand.hbm [shape: f32[16,32], index: 3, kind: output, shape index: {}]  }
   0x1   :  { %10 = vsyncpa [#allocation8], 0 }
   0x2   :  { %11 = vsyncpa [#allocation6], 0  ;;  %s257_s12 = smov [#allocation4]  }
   0x3   :  { %s17_s13 = sshll.u32 %s257_s12, 4  ;;  %s18_s13 = int_to_ptr.vmem [resolvable:$true] %s17_s13 }
   0x4   :  { %s199_s14 = scalar_lea.vmem %s18_s13, 256  ;;  %p204_p1 = scmp.lt.s32.totalorder %s18_s13, %s18_s13 }
   0x5   :  { %p200_p0 = scmp.ne.s32.totalorder %s18_s13, %s199_s14  ;;  %p205_p2 = scmp.lt.s32.totalorder %s199_s14, %s199_s14 }
   0x7   :  { %p206_p3 = por %p205_p2, %p204_p1 }
   0x9   :  { %p207_p4 = pnand %p206_p3, %p200_p0 }
   0xb   :  { %210 = shalt.err (!%p207_p4)
}
   0xc   :  { %s258_s0 = smov 128   ;;  %s259_s15 = smov 8  }
   0xd   :  { %23 = dma.hbm_to_vmem [thread:$0]  %s300_s1, 256, %s18_s13, [#allocation5], %s258_s0, %s258_s0, %s259_s15  }
   0xe   :  { %s260_s18 = smov [#allocation7]  }
   0xf   :  { %s30_s19 = sshll.u32 %s260_s18, 4  ;;  %s31_s19 = int_to_ptr.vmem [resolvable:$true] %s30_s19 }
  0x10   :  { %s219_s20 = scalar_lea.vmem %s31_s19, 128  ;;  %p224_p6 = scmp.lt.s32.totalorder %s31_s19, %s31_s19 }
  0x11   :  { %p220_p5 = scmp.ne.s32.totalorder %s31_s19, %s219_s20  ;;  %p225_p7 = scmp.lt.s32.totalorder %s219_s20, %s219_s20 }
  0x13   :  { %p226_p8 = por %p225_p7, %p224_p6 }
  0x15   :  { %p227_p9 = pnand %p226_p8, %p220_p5 }
  0x17   :  { %230 = shalt.err (!%p227_p9)
}
  0x18   :  { %33 = dma.hbm_to_vmem [thread:$0]  %s301_s2, 128, %s31_s19, [#allocation8]  }
  0x19   :  { %251 = dma.done.wait [#allocation5], 256  }
  0x1a   :  { %252 = vsyncadd [#allocation5], 4294967040 }
  0x1b   :  { %253 = dma.done.wait [#allocation8], 128  }
  0x1c   :  { %254 = vsyncadd [#allocation8], 4294967168  ;;  %v48_v0 = vlaneseq  ;;  %v261_v1 = vmov 1966171168   ;;  %v262_v6 = vmov 1983009808  }
  0x1d   :  { %v46_v2 = vunpack.c.l.s4 %v261_v1  ;;  %v128_v7 = vunpack.c.l.s4 %v262_v6  ;;  %v42_v8 = vld [vmem:[#allocation7] sm:$0xff]  ;;  %v40_v40 = vld [vmem:[#allocation4] sm:$0xff]  ;;  %vm163_vm0 = vcmask 261120   ;;  %v41_v43 = vld [vmem:[#allocation4 + $0x8] sm:$0xff]  ;;  %s263_s1 = smov [#allocation9]  }
  0x1e   :  { %v49_v3 = vshrl.u32 %v48_v0, 7  ;;  %v44_v11 = vcombine.high %v42_v8, %v42_v8  ;;  %s171_s2 = sshll.u32 %s263_s1, 4  ;;  %s172_s2 = int_to_ptr.vmem [resolvable:$true] %s171_s2 }
  0x1f   :  { %v47_v4 = vunpack.c.0.s8 %v46_v2  ;;  %v129_v12 = vunpack.c.0.s8 %v128_v7  ;;  %s231_s23 = scalar_lea.vmem %s172_s2, 256  ;;  %p236_p11 = scmp.lt.s32.totalorder %s172_s2, %s172_s2 }
  0x20   :  { %v95_v10 = vsub.s32 0, %v49_v3  ;;  %p232_p10 = scmp.ne.s32.totalorder %s172_s2, %s231_s23  ;;  %p237_p12 = scmp.lt.s32.totalorder %s231_s23, %s231_s23 }
  0x21   :  { %v50_v5 = vsub.s32 %v47_v4, %v49_v3  ;;  %v132_v20 = vsub.s32 %v129_v12, %v49_v3 }
  0x22   :  { %p238_p13 = por %p237_p12, %p236_p11 }
  0x23   :  { %v51_v9 = vrot.slane %v42_v8, %v50_v5  ;;  %v58_v15 = vrot.slane %v44_v11, %v50_v5 }
  0x24   :  { %p239_p0 = pnand %p238_p13, %p232_p10 }
  0x25   :  { %v59_v13 = vcombine.high %v51_v9, %v51_v9  ;;  %v67_v14 = vrot.slane %v51_v9, %v50_v5  ;;  %v60_v19 = vcombine.high %v58_v15, %v58_v15  ;;  %v74_v21 = vrot.slane %v58_v15, %v50_v5 }
  0x27   :  { %v81_v16 = vrot.slane %v59_v13, %v50_v5  ;;  %v89_v17 = vcombine.high %v67_v14, %v67_v14  ;;  %v96_v18 = vrot.slane %v67_v14, %v95_v10  ;;  %v88_v25 = vrot.slane %v60_v19, %v50_v5 }
  0x28   :  { %v90_v26 = vcombine.high %v74_v21, %v74_v21  ;;  %v112_v27 = vrot.slane %v74_v21, %v95_v10 }
  0x29   :  { %v91_v22 = vcombine.high %v81_v16, %v81_v16  ;;  %v100_v23 = vrot.slane %v81_v16, %v95_v10  ;;  %v104_v24 = vrot.slane %v89_v17, %v95_v10  ;;  %v92_v30 = vcombine.high %v88_v25, %v88_v25 }
  0x2a   :  { %v116_v31 = vrot.slane %v88_v25, %v95_v10  ;;  %v120_v32 = vrot.slane %v90_v26, %v95_v10 }
  0x2b   :  { %v108_v28 = vrot.slane %v91_v22, %v95_v10  ;;  %v125_v29 = vcombine.low %v96_v18, %v100_v23  ;;  %v124_v35 = vrot.slane %v92_v30, %v95_v10 }
  0x2c   :  { %v142_v36 = vcombine.low %v112_v27, %v116_v31 }
  0x2d   :  { %v126_v33 = vcombine.low %v104_v24, %v108_v28  ;;  %v133_v34 = vrot.slane %v125_v29, %v132_v20  ;;  %v143_v38 = vcombine.low %v120_v32, %v124_v35 }
  0x2e   :  { %v150_v39 = vrot.slane %v142_v36, %v132_v20 }
  0x2f   :  { %v140_v37 = vrot.slane %v126_v33, %v132_v20  ;;  %v157_v42 = vrot.slane %v143_v38, %v132_v20 }
  0x31   :  { %v141_v41 = vcombine.low %v133_v34, %v140_v37  ;;  %v158_v45 = vcombine.low %v150_v39, %v157_v42 }
  0x33   :  { %v161_v44 = vadd.f32 %v141_v41, %v40_v40  ;;  %v162_v46 = vadd.f32 %v158_v45, %v41_v43 }
  0x35   :  { %164 = vst.msk [vmem:[#allocation9] sm:$0xff] %vm163_vm0, %v161_v44  ;;  %165 = vst.msk [vmem:[#allocation9 + $0x8] sm:$0xff] %vm163_vm0, %v162_v46 }
  0x36   :  { %242 = shalt.err (!%p239_p0)
}
  0x37   :  { %177 = dma.vmem_to_hbm [thread:$0]  %s172_s2, 256, %s302_s3, [#allocation6], %s258_s0, %s258_s0, %s259_s15  }
  0x38   :  { %255 = dma.done.wait [#allocation6], 256  }
  0x39   :  { %256 = vsyncadd [#allocation6], 4294967040 }
  0x3a   :  { %181 = vsyncpa [#allocation5], 1 }
  0x3b   :  { %182 = vsyncpa [#allocation8], 1 }
  0x3c   :  { %183 = vsyncpa [#allocation6], 1 }

</bundles_post_ra>
